<compile_context>
chip_gen: v5e
topology: v5e:2x2
jax: 0.10.0
libtpu: 0.0.40
codegen_flags: <defaults>
</compile_context>

<pallas_src>
import functools

import jax
import jax.numpy as jnp
import numpy as np
from jax import lax
from jax.experimental import pallas as pl
from jax.experimental.pallas import tpu as pltpu


def _gated_kernel(col_ref, vcur_ref, hcur_ref, *refs, dim, cin, W, tile_n,
                  pad, ksize, mask, cdt, has_prev):
    f32 = jnp.float32
    if has_prev:
        vprev_ref, *refs = refs
    (wv_ref, bv_ref, bvv2_ref, bvh_ref, wh_ref, bh_ref,
     wres_ref, bres_ref, vout_ref, hout_ref) = refs

    t = pl.program_id(1)
    lshift = pad + (1 if mask == 'A' else 0)
    halo_v = (pad + 1) * W + pad

    # ---- hoisted per-lane masks (one compare/cast per distinct offset) -----
    col = col_ref[...]                                        # (1, tile_n) i32
    lane = lax.broadcasted_iota(jnp.int32, (1, tile_n), 1)
    djs = ({j - pad for j in range(ksize) if j != pad}
           | {j - lshift for j in range(pad + 1) if j != lshift}
           | ({-1} if mask == 'A' else set()))
    colmask = {dj: jnp.logical_and(col + dj >= 0, col + dj < W).astype(f32)
               for dj in sorted(djs)}
    # v_pad2 + crop: vertical-stack output row 0 of every image is exactly 0.
    rowmask = ((t * tile_n + lane) >= W).astype(f32)          # (1, tile_n)

    # ---------------------------- vertical stack ----------------------------
    x_v = vcur_ref[0].astype(f32)                             # (Cin, tile_n)
    if has_prev:
        # Previous-tile tail supplies the (pad+1)-row history; tile 0 is the
        # image top, where that history must be the v_pad1 zero padding.
        hist = vprev_ref[0, :, tile_n - halo_v:].astype(f32)
        hist = hist * (t > 0).astype(f32)
    else:
        hist = jnp.zeros((cin, halo_v), f32)                  # whole-image tile
    ext_v = jnp.concatenate([hist, x_v], axis=1)              # (Cin, tile_n+halo_v)

    vtaps = []
    for i in range(pad + 1):
        for j in range(ksize):
            off = halo_v + (i - (pad + 1)) * W + (j - pad)    # always >= 0
            tap = ext_v[:, off:off + tile_n]
            dj = j - pad
            if dj != 0:                        # out-of-row columns -> 0 (f32)
                tap = tap * colmask[dj]
            vtaps.append(tap.astype(cdt))
    vstk = jnp.concatenate(vtaps, axis=0)                     # (n_vtaps*Cin, tile_n)

    # One fused MXU matmul yields both the vertical pre-activation and the
    # 1x1 vh projection (wrapper stacked the weights as [wv ; wvh @ wv]).
    big = jnp.dot(wv_ref[...], vstk, preferred_element_type=f32)   # (4*dim, tile_n)
    v_pre = (big[:2 * dim] + bv_ref[...]) * rowmask
    vh = (big[2 * dim:] + bvv2_ref[...]) * rowmask + bvh_ref[...]

    vout_ref[0] = (jnp.tanh(v_pre[:dim]) *
                   jax.nn.sigmoid(v_pre[dim:])).astype(vout_ref.dtype)

    # --------------------------- horizontal stack ---------------------------
    # h taps never need valid cross-tile data: any tap outside the current row
    # is column-masked to zero, so zero left-padding is sufficient.
    x_h = hcur_ref[0]                                         # (Cin, tile_n) f32
    ext_h = jnp.concatenate(
        [jnp.zeros((cin, lshift), x_h.dtype), x_h], axis=1)
    htaps = []
    for j in range(pad + 1):
        dj = j - lshift
        tap = ext_h[:, j:j + tile_n]
        if dj != 0:
            tap = tap * colmask[dj]
        htaps.append(tap.astype(cdt))
    hstk = jnp.concatenate(htaps, axis=0)                     # (n_htaps*Cin, tile_n)

    h_pre = jnp.dot(wh_ref[...], hstk, preferred_element_type=f32) + bh_ref[...]
    if mask == 'A':
        h_pre = h_pre * colmask[-1]            # h_pad2 + crop: column 0 is 0

    h_sum = h_pre + vh
    h_gated = jnp.tanh(h_sum[:dim]) * jax.nn.sigmoid(h_sum[dim:])
    h_res = jnp.dot(wres_ref[...], h_gated.astype(cdt),
                    preferred_element_type=f32) + bres_ref[...]
    if mask == 'B':
        h_res = h_res + x_h                    # residual add stays in f32
    hout_ref[0] = h_res.astype(hout_ref.dtype)


def gated_masked_conv2d(v_map, h_map, params, *, kernel_size=3, mask='B',
                        compute_dtype=jnp.bfloat16, out_dtype=None,
                        force_tile_h=None):
    """v_map, h_map: float32 NCHW.  Returns (v_map_out, h_map_out) in NCHW.

    compute_dtype: MXU operand dtype (bf16 default; accumulation always f32).
    out_dtype: HBM output dtype (default = input dtype; bf16 halves writes).
    """
    assert mask in ('A', 'B')
    pad = kernel_size // 2
    ksize = kernel_size
    B, Cin, H, W = v_map.shape
    dim = params['wres'].shape[0]
    n = H * W
    f32 = jnp.float32
    out_dtype = v_map.dtype if out_dtype is None else out_dtype

    n_vtaps = (pad + 1) * ksize
    n_htaps = pad + 1
    halo_v = (pad + 1) * W + pad

    # --------------------- VMEM-budget-driven tile choice -------------------
    try:
        vmem_cap = int(pltpu.get_tpu_info().vmem_capacity_bytes)
    except Exception:
        vmem_cap = 64 * 1024 * 1024           # conservative (v7x-sized) default
    budget = vmem_cap // 2

    in_b = jnp.dtype(v_map.dtype).itemsize
    out_b = jnp.dtype(out_dtype).itemsize
    cdt_b = jnp.dtype(compute_dtype).itemsize

    def _vmem_est(tile_n, has_prev):
        stream = ((2 + int(has_prev)) * Cin * tile_n * in_b
                  + 2 * dim * tile_n * out_b) * 2            # double-buffered
        work = ((n_vtaps + n_htaps) * Cin * tile_n * cdt_b   # tap stacks
                + 2 * Cin * (tile_n + halo_v) * 4            # extended views
                + 10 * dim * tile_n * 4)                     # f32 temporaries
        weights = (4 * dim * n_vtaps * Cin + 2 * dim * n_htaps * Cin
                   + dim * dim) * cdt_b + 16 * dim * 4
        return stream + work + weights + (1 << 20)           # +1 MiB slack

    def _select_tiling():
        whole_ok = _vmem_est(n, False) <= budget
        if whole_ok and B >= 2:
            return H, False                   # one whole image per grid step
        # Row split: needed either because the whole image busts the VMEM
        # budget, or because B == 1 and we want >= 2 parallel grid units so
        # both v7x TensorCores get work.
        for th in range(H - 1, 0, -1):
            tn = th * W
            if H % th or tn % 128 or tn < halo_v:
                continue
            if _vmem_est(tn, True) <= budget:
                return th, True
        # No lane-aligned split exists: whole image (correctness first).
        return H, False

    if force_tile_h is None:
        tile_h, has_prev = _select_tiling()
    else:
        tile_h = int(force_tile_h)
        assert H % tile_h == 0
        has_prev = tile_h < H
        if has_prev:
            assert (tile_h * W) % 128 == 0 and tile_h * W >= halo_v
    tile_n = tile_h * W
    n_tiles = H // tile_h

    # --------------------------- operand prep -------------------------------
    # NCHW is already channel-major per image: reshape only, no HBM copies.
    v_flat = v_map.reshape(B, Cin, n)
    h_flat = h_map.reshape(B, Cin, n)

    HIGH = lax.Precision.HIGHEST
    wv2d = jnp.transpose(params['wv'], (3, 0, 1, 2)).reshape(
        2 * dim, n_vtaps * Cin).astype(f32)
    wvhT = jnp.transpose(params['wvh']).astype(f32)
    # Fuse the 1x1 vh conv into the vertical conv (one MXU call for both).
    wv_fused = jnp.concatenate(
        [wv2d, jnp.dot(wvhT, wv2d, precision=HIGH)], axis=0).astype(compute_dtype)
    bv = params['bv'].reshape(2 * dim, 1).astype(f32)
    bvv2 = jnp.dot(wvhT, params['bv'].astype(f32),
                   precision=HIGH).reshape(2 * dim, 1)
    bvh = params['bvh'].reshape(2 * dim, 1).astype(f32)
    wh2d = jnp.transpose(params['wh'][0], (2, 0, 1)).reshape(
        2 * dim, n_htaps * Cin).astype(compute_dtype)
    bh = params['bh'].reshape(2 * dim, 1).astype(f32)
    wresT = jnp.transpose(params['wres']).astype(compute_dtype)
    bres = params['bres'].reshape(dim, 1).astype(f32)

    # Lane -> image-column lookup (tiles start on row boundaries, so one tiny
    # vector serves every tile); avoids an integer modulo per grid step.
    col_ids = (jnp.arange(tile_n, dtype=jnp.int32) % W).reshape(1, tile_n)

    kern = functools.partial(_gated_kernel, dim=dim, cin=Cin, W=W,
                             tile_n=tile_n, pad=pad, ksize=ksize, mask=mask,
                             cdt=compute_dtype, has_prev=has_prev)

    def _full(a):
        nd = a.ndim
        return pl.BlockSpec(a.shape, lambda b, t: (0,) * nd)

    cur_spec = pl.BlockSpec((1, Cin, tile_n), lambda b, t: (b, 0, t))

    inputs = [col_ids, v_flat, h_flat]
    in_specs = [_full(col_ids), cur_spec, cur_spec]
    if has_prev:
        # Same HBM array again, mapped to the *previous* tile: supplies the
        # (pad+1)-row history the vertical taps need (tile 0 zeroes it).
        inputs.append(v_flat)
        in_specs.append(pl.BlockSpec(
            (1, Cin, tile_n), lambda b, t: (b, 0, jnp.maximum(t - 1, 0))))
    weights = (wv_fused, bv, bvv2, bvh, wh2d, bh, wresT, bres)
    inputs += list(weights)
    in_specs += [_full(a) for a in weights]

    out_specs = (pl.BlockSpec((1, dim, tile_n), lambda b, t: (b, 0, t)),
                 pl.BlockSpec((1, dim, tile_n), lambda b, t: (b, 0, t)))

    vmem_limit = int(min(vmem_cap * 3 // 4,
                         max(2 * _vmem_est(tile_n, has_prev),
                             32 * 1024 * 1024)))

    v_out_f, h_out_f = pl.pallas_call(
        kern,
        out_shape=(jax.ShapeDtypeStruct((B, dim, n), out_dtype),
                   jax.ShapeDtypeStruct((B, dim, n), out_dtype)),
        grid=(B, n_tiles),
        in_specs=in_specs,
        out_specs=out_specs,
        compiler_params=pltpu.CompilerParams(
            dimension_semantics=("parallel", "parallel"),
            vmem_limit_bytes=vmem_limit),
    )(*inputs)

    # Channel-major flat == NCHW flat: reshape only.
    return (v_out_f.reshape(B, dim, H, W), h_out_f.reshape(B, dim, H, W))


# ---------------------------- pure-JAX reference ----------------------------
def _conv_nchw(x, w_oihw, b):
    y = lax.conv_general_dilated(x, w_oihw, (1, 1), 'VALID',
                                 dimension_numbers=('NCHW', 'OIHW', 'NCHW'),
                                 precision=lax.Precision.HIGHEST)
    return y + b[None, :, None, None]


def reference(v_map, h_map, params, *, kernel_size=3, mask='B'):
    pad = kernel_size // 2
    dim = params['wres'].shape[0]
    wv = jnp.transpose(params['wv'], (3, 2, 0, 1))      # -> OIHW
    wh = jnp.transpose(params['wh'], (3, 2, 0, 1))
    wvh = jnp.transpose(params['wvh'])[:, :, None, None]
    wres = jnp.transpose(params['wres'])[:, :, None, None]

    v_p = jnp.pad(v_map, ((0, 0), (0, 0), (pad, 0), (pad, pad)))   # v_pad1
    v_c = _conv_nchw(v_p, wv, params['bv'])
    v_out = jnp.pad(v_c, ((0, 0), (0, 0), (1, 0), (0, 0)))[:, :, :-1, :]
    v_map_out = jnp.tanh(v_out[:, :dim]) * jax.nn.sigmoid(v_out[:, dim:])
    vh = _conv_nchw(v_out, wvh, params['bvh'])

    h_p = jnp.pad(h_map, ((0, 0), (0, 0), (0, 0), (pad, 0)))       # h_pad1
    h_c = _conv_nchw(h_p, wh, params['bh'])
    if mask == 'A':
        h_c = jnp.pad(h_c, ((0, 0), (0, 0), (0, 0), (1, 0)))[:, :, :, :-1]
    h_out = h_c + vh
    h_out = jnp.tanh(h_out[:, :dim]) * jax.nn.sigmoid(h_out[:, dim:])
    h_map_out = _conv_nchw(h_out, wres, params['bres'])
    if mask == 'B':
        h_map_out = h_map_out + h_map
    return v_map_out, h_map_out


if __name__ == "__main__":
    key = jax.random.PRNGKey(0)
    ks = jax.random.split(key, 10)

    B, Cin, H, W = 2, 4, 16, 16
    kernel_size = 3
    dim = Cin                      # out_dim defaults to in_dim
    pad = kernel_size // 2

    # Deterministic synthetic parameters (kh, kw, Cin, Cout layout).
    params = {
        'wv':   0.1 * jax.random.normal(ks[0], (pad + 1, kernel_size, Cin, 2 * dim), jnp.float32),
        'bv':   0.1 * jax.random.normal(ks[1], (2 * dim,), jnp.float32),
        'wvh':  0.1 * jax.random.normal(ks[2], (2 * dim, 2 * dim), jnp.float32),
        'bvh':  0.1 * jax.random.normal(ks[3], (2 * dim,), jnp.float32),
        'wh':   0.1 * jax.random.normal(ks[4], (1, pad + 1, Cin, 2 * dim), jnp.float32),
        'bh':   0.1 * jax.random.normal(ks[5], (2 * dim,), jnp.float32),
        'wres': 0.1 * jax.random.normal(ks[6], (dim, dim), jnp.float32),
        'bres': 0.1 * jax.random.normal(ks[7], (dim,), jnp.float32),
    }
    v_map = jax.random.normal(ks[8], (B, Cin, H, W), jnp.float32)
    h_map = jax.random.normal(ks[9], (B, Cin, H, W), jnp.float32)

    for mask in ('B', 'A'):
        v_want, h_want = reference(v_map, h_map, params,
                                   kernel_size=kernel_size, mask=mask)
        # (compute dtype, forced row-tile height, tolerance):
        #   whole-image tiles exercise the zero-history path; forced tile_h=8
        #   exercises the multi-tile path with real previous-tile history.
        configs = ((jnp.float32, None, 1e-3),
                   (jnp.bfloat16, None, 3e-2),
                   (jnp.float32, 8, 1e-3),
                   (jnp.bfloat16, 8, 3e-2))
        for cdt, th, tol in configs:
            v_out, h_out = gated_masked_conv2d(v_map, h_map, params,
                                               kernel_size=kernel_size,
                                               mask=mask, compute_dtype=cdt,
                                               force_tile_h=th)
            jax.block_until_ready((v_out, h_out))
            np.testing.assert_allclose(np.asarray(v_out), np.asarray(v_want),
                                       rtol=tol, atol=tol)
            np.testing.assert_allclose(np.asarray(h_out), np.asarray(h_want),
                                       rtol=tol, atol=tol)

    print("KERNEL_OK")
</pallas_src>

<mosaic_0001>
module attributes {stable_mosaic.version = 11 : i64} {
  func.func @_gated_kernel(%arg0: i32, %arg1: i32, %arg2: memref<1x256xi32, #tpu.memory_space<vmem>>, %arg3: memref<1x4x256xf32, #tpu.memory_space<vmem>>, %arg4: memref<1x4x256xf32, #tpu.memory_space<vmem>>, %arg5: memref<16x24xf32, #tpu.memory_space<vmem>>, %arg6: memref<8x1xf32, #tpu.memory_space<vmem>>, %arg7: memref<8x1xf32, #tpu.memory_space<vmem>>, %arg8: memref<8x1xf32, #tpu.memory_space<vmem>>, %arg9: memref<8x8xf32, #tpu.memory_space<vmem>>, %arg10: memref<8x1xf32, #tpu.memory_space<vmem>>, %arg11: memref<4x4xf32, #tpu.memory_space<vmem>>, %arg12: memref<4x1xf32, #tpu.memory_space<vmem>>, %arg13: memref<1x4x256xf32, #tpu.memory_space<vmem>>, %arg14: memref<1x4x256xf32, #tpu.memory_space<vmem>>) attributes {dimension_semantics = [#tpu.dimension_semantics<parallel>, #tpu.dimension_semantics<parallel>], iteration_bounds = array<i64: 2, 1>, scalar_prefetch = 0 : i64, scratch_operands = 0 : i64, tpu.core_type = #tpu.core_type<tc>, window_params = [{pipeline_mode = #tpu.pipeline_mode<synchronous>, transform_indices = @transform_0, window_bounds = array<i64: 1, 256>}, {transform_indices = @transform_1, window_bounds = array<i64: 1, 4, 256>}, {transform_indices = @transform_2, window_bounds = array<i64: 1, 4, 256>}, {pipeline_mode = #tpu.pipeline_mode<synchronous>, transform_indices = @transform_3, window_bounds = array<i64: 16, 24>}, {pipeline_mode = #tpu.pipeline_mode<synchronous>, transform_indices = @transform_4, window_bounds = array<i64: 8, 1>}, {pipeline_mode = #tpu.pipeline_mode<synchronous>, transform_indices = @transform_5, window_bounds = array<i64: 8, 1>}, {pipeline_mode = #tpu.pipeline_mode<synchronous>, transform_indices = @transform_6, window_bounds = array<i64: 8, 1>}, {pipeline_mode = #tpu.pipeline_mode<synchronous>, transform_indices = @transform_7, window_bounds = array<i64: 8, 8>}, {pipeline_mode = #tpu.pipeline_mode<synchronous>, transform_indices = @transform_8, window_bounds = array<i64: 8, 1>}, {pipeline_mode = #tpu.pipeline_mode<synchronous>, transform_indices = @transform_9, window_bounds = array<i64: 4, 4>}, {pipeline_mode = #tpu.pipeline_mode<synchronous>, transform_indices = @transform_10, window_bounds = array<i64: 4, 1>}, {transform_indices = @transform_11, window_bounds = array<i64: 1, 4, 256>}, {transform_indices = @transform_12, window_bounds = array<i64: 1, 4, 256>}]} {
    %c0 = arith.constant 0 : index
    %c0_0 = arith.constant 0 : index
    %0 = vector.load %arg2[%c0, %c0_0] : memref<1x256xi32, #tpu.memory_space<vmem>>, vector<1x256xi32>
    %1 = tpu.iota {dimensions = array<i32: 1>} : vector<1x256xi32>
    %c-1_i32 = arith.constant -1 : i32
    %2 = vector.broadcast %c-1_i32 : i32 to vector<1x256xi32>
    %3 = arith.addi %0, %2 : vector<1x256xi32>
    %c0_i32 = arith.constant 0 : i32
    %4 = vector.broadcast %c0_i32 : i32 to vector<1x256xi32>
    %5 = arith.cmpi sge, %3, %4 : vector<1x256xi32>
    %c-1_i32_1 = arith.constant -1 : i32
    %6 = vector.broadcast %c-1_i32_1 : i32 to vector<1x256xi32>
    %7 = arith.addi %0, %6 : vector<1x256xi32>
    %c16_i32 = arith.constant 16 : i32
    %8 = vector.broadcast %c16_i32 : i32 to vector<1x256xi32>
    %9 = arith.cmpi slt, %7, %8 : vector<1x256xi32>
    %10 = arith.andi %5, %9 : vector<1x256xi1>
    %11 = arith.extui %10 : vector<1x256xi1> to vector<1x256xi32>
    %12 = arith.sitofp %11 : vector<1x256xi32> to vector<1x256xf32>
    %c1_i32 = arith.constant 1 : i32
    %13 = vector.broadcast %c1_i32 : i32 to vector<1x256xi32>
    %14 = arith.addi %0, %13 : vector<1x256xi32>
    %c0_i32_2 = arith.constant 0 : i32
    %15 = vector.broadcast %c0_i32_2 : i32 to vector<1x256xi32>
    %16 = arith.cmpi sge, %14, %15 : vector<1x256xi32>
    %c1_i32_3 = arith.constant 1 : i32
    %17 = vector.broadcast %c1_i32_3 : i32 to vector<1x256xi32>
    %18 = arith.addi %0, %17 : vector<1x256xi32>
    %c16_i32_4 = arith.constant 16 : i32
    %19 = vector.broadcast %c16_i32_4 : i32 to vector<1x256xi32>
    %20 = arith.cmpi slt, %18, %19 : vector<1x256xi32>
    %21 = arith.andi %16, %20 : vector<1x256xi1>
    %22 = arith.extui %21 : vector<1x256xi1> to vector<1x256xi32>
    %23 = arith.sitofp %22 : vector<1x256xi32> to vector<1x256xf32>
    %c256_i32 = arith.constant 256 : i32
    %24 = arith.muli %arg1, %c256_i32 : i32
    %25 = vector.broadcast %24 : i32 to vector<1x256xi32>
    %26 = arith.addi %25, %1 : vector<1x256xi32>
    %c16_i32_5 = arith.constant 16 : i32
    %27 = vector.broadcast %c16_i32_5 : i32 to vector<1x256xi32>
    %28 = arith.cmpi sge, %26, %27 : vector<1x256xi32>
    %29 = arith.extui %28 : vector<1x256xi1> to vector<1x256xi32>
    %30 = arith.sitofp %29 : vector<1x256xi32> to vector<1x256xf32>
    %c0_6 = arith.constant 0 : index
    %c0_7 = arith.constant 0 : index
    %c0_8 = arith.constant 0 : index
    %31 = vector.load %arg3[%c0_6, %c0_7, %c0_8] : memref<1x4x256xf32, #tpu.memory_space<vmem>>, vector<1x4x256xf32>
    %32 = vector.shape_cast %31 : vector<1x4x256xf32> to vector<4x256xf32>
    %cst = arith.constant 0.000000e+00 : f32
    %33 = vector.broadcast %cst : f32 to vector<4x33xf32>
    %34 = tpu.concatenate %33, %32 in 1 : vector<4x33xf32>, vector<4x256xf32> -> vector<4x289xf32>
    %35 = vector.extract_strided_slice %34 {offsets = [0, 0], sizes = [4, 256], strides = [1, 1]} : vector<4x289xf32> to vector<4x256xf32>
    %36 = vector.broadcast %12 : vector<1x256xf32> to vector<4x256xf32>
    %37 = arith.mulf %35, %36 : vector<4x256xf32>
    %38 = vector.extract_strided_slice %34 {offsets = [0, 1], sizes = [4, 256], strides = [1, 1]} : vector<4x289xf32> to vector<4x256xf32>
    %39 = vector.extract_strided_slice %34 {offsets = [0, 2], sizes = [4, 256], strides = [1, 1]} : vector<4x289xf32> to vector<4x256xf32>
    %40 = vector.broadcast %23 : vector<1x256xf32> to vector<4x256xf32>
    %41 = arith.mulf %39, %40 : vector<4x256xf32>
    %42 = vector.extract_strided_slice %34 {offsets = [0, 16], sizes = [4, 256], strides = [1, 1]} : vector<4x289xf32> to vector<4x256xf32>
    %43 = vector.broadcast %12 : vector<1x256xf32> to vector<4x256xf32>
    %44 = arith.mulf %42, %43 : vector<4x256xf32>
    %45 = vector.extract_strided_slice %34 {offsets = [0, 17], sizes = [4, 256], strides = [1, 1]} : vector<4x289xf32> to vector<4x256xf32>
    %46 = vector.extract_strided_slice %34 {offsets = [0, 18], sizes = [4, 256], strides = [1, 1]} : vector<4x289xf32> to vector<4x256xf32>
    %47 = vector.broadcast %23 : vector<1x256xf32> to vector<4x256xf32>
    %48 = arith.mulf %46, %47 : vector<4x256xf32>
    %49 = tpu.concatenate %37, %38, %41, %44, %45, %48 in 0 : vector<4x256xf32>, vector<4x256xf32>, vector<4x256xf32>, vector<4x256xf32>, vector<4x256xf32>, vector<4x256xf32> -> vector<24x256xf32>
    %c0_9 = arith.constant 0 : index
    %c0_10 = arith.constant 0 : index
    %50 = vector.load %arg5[%c0_9, %c0_10] : memref<16x24xf32, #tpu.memory_space<vmem>>, vector<16x24xf32>
    %cst_11 = arith.constant dense<0.000000e+00> : vector<16x256xf32>
    %51 = tpu.matmul %50, %49, %cst_11 {dimension_numbers = #tpu.dot_dimension_numbers<[1], [0], [0], [1], [0, 0, 1, 1], [], []>} : vector<16x24xf32>, vector<24x256xf32>, vector<16x256xf32> -> vector<16x256xf32>
    %52 = vector.extract_strided_slice %51 {offsets = [0, 0], sizes = [8, 256], strides = [1, 1]} : vector<16x256xf32> to vector<8x256xf32>
    %c0_12 = arith.constant 0 : index
    %c0_13 = arith.constant 0 : index
    %53 = vector.load %arg6[%c0_12, %c0_13] : memref<8x1xf32, #tpu.memory_space<vmem>>, vector<8x1xf32>
    %54 = vector.broadcast %53 : vector<8x1xf32> to vector<8x256xf32>
    %55 = arith.addf %52, %54 : vector<8x256xf32>
    %56 = vector.broadcast %30 : vector<1x256xf32> to vector<8x256xf32>
    %57 = arith.mulf %55, %56 : vector<8x256xf32>
    %58 = vector.extract_strided_slice %51 {offsets = [8, 0], sizes = [8, 256], strides = [1, 1]} : vector<16x256xf32> to vector<8x256xf32>
    %c0_14 = arith.constant 0 : index
    %c0_15 = arith.constant 0 : index
    %59 = vector.load %arg7[%c0_14, %c0_15] : memref<8x1xf32, #tpu.memory_space<vmem>>, vector<8x1xf32>
    %60 = vector.broadcast %59 : vector<8x1xf32> to vector<8x256xf32>
    %61 = arith.addf %58, %60 : vector<8x256xf32>
    %62 = vector.broadcast %30 : vector<1x256xf32> to vector<8x256xf32>
    %63 = arith.mulf %61, %62 : vector<8x256xf32>
    %c0_16 = arith.constant 0 : index
    %c0_17 = arith.constant 0 : index
    %64 = vector.load %arg8[%c0_16, %c0_17] : memref<8x1xf32, #tpu.memory_space<vmem>>, vector<8x1xf32>
    %65 = vector.broadcast %64 : vector<8x1xf32> to vector<8x256xf32>
    %66 = arith.addf %63, %65 : vector<8x256xf32>
    %67 = vector.extract_strided_slice %57 {offsets = [0, 0], sizes = [4, 256], strides = [1, 1]} : vector<8x256xf32> to vector<4x256xf32>
    %68 = math.tanh %67 : vector<4x256xf32>
    %69 = vector.extract_strided_slice %57 {offsets = [4, 0], sizes = [4, 256], strides = [1, 1]} : vector<8x256xf32> to vector<4x256xf32>
    %70 = arith.negf %69 : vector<4x256xf32>
    %71 = math.exp %70 : vector<4x256xf32>
    %cst_18 = arith.constant 1.000000e+00 : f32
    %72 = vector.broadcast %cst_18 : f32 to vector<4x256xf32>
    %73 = arith.addf %72, %71 : vector<4x256xf32>
    %74 = arith.divf %72, %73 : vector<4x256xf32>
    %75 = arith.mulf %68, %74 : vector<4x256xf32>
    %c0_19 = arith.constant 0 : index
    %c0_20 = arith.constant 0 : index
    %c0_21 = arith.constant 0 : index
    %76 = vector.load %arg13[%c0_19, %c0_20, %c0_21] : memref<1x4x256xf32, #tpu.memory_space<vmem>>, vector<1x4x256xf32>
    %77 = vector.shape_cast %76 : vector<1x4x256xf32> to vector<4x256xf32>
    %78 = vector.shape_cast %75 : vector<4x256xf32> to vector<1x4x256xf32>
    tpu.vector_store %arg13[%c0_19, %c0_20, %c0_21], %78 {strides = array<i32>} : memref<1x4x256xf32, #tpu.memory_space<vmem>>, vector<1x4x256xf32>,
    %c0_22 = arith.constant 0 : index
    %c0_23 = arith.constant 0 : index
    %c0_24 = arith.constant 0 : index
    %79 = vector.load %arg4[%c0_22, %c0_23, %c0_24] : memref<1x4x256xf32, #tpu.memory_space<vmem>>, vector<1x4x256xf32>
    %80 = vector.shape_cast %79 : vector<1x4x256xf32> to vector<4x256xf32>
    %cst_25 = arith.constant 0.000000e+00 : f32
    %81 = vector.broadcast %cst_25 : f32 to vector<4x1xf32>
    %82 = tpu.concatenate %81, %80 in 1 : vector<4x1xf32>, vector<4x256xf32> -> vector<4x257xf32>
    %83 = vector.extract_strided_slice %82 {offsets = [0, 0], sizes = [4, 256], strides = [1, 1]} : vector<4x257xf32> to vector<4x256xf32>
    %84 = vector.broadcast %12 : vector<1x256xf32> to vector<4x256xf32>
    %85 = arith.mulf %83, %84 : vector<4x256xf32>
    %86 = vector.extract_strided_slice %82 {offsets = [0, 1], sizes = [4, 256], strides = [1, 1]} : vector<4x257xf32> to vector<4x256xf32>
    %87 = tpu.concatenate %85, %86 in 0 : vector<4x256xf32>, vector<4x256xf32> -> vector<8x256xf32>
    %c0_26 = arith.constant 0 : index
    %c0_27 = arith.constant 0 : index
    %88 = vector.load %arg9[%c0_26, %c0_27] : memref<8x8xf32, #tpu.memory_space<vmem>>, vector<8x8xf32>
    %cst_28 = arith.constant dense<0.000000e+00> : vector<8x256xf32>
    %89 = tpu.matmul %88, %87, %cst_28 {dimension_numbers = #tpu.dot_dimension_numbers<[1], [0], [0], [1], [0, 0, 1, 1], [], []>} : vector<8x8xf32>, vector<8x256xf32>, vector<8x256xf32> -> vector<8x256xf32>
    %c0_29 = arith.constant 0 : index
    %c0_30 = arith.constant 0 : index
    %90 = vector.load %arg10[%c0_29, %c0_30] : memref<8x1xf32, #tpu.memory_space<vmem>>, vector<8x1xf32>
    %91 = vector.broadcast %90 : vector<8x1xf32> to vector<8x256xf32>
    %92 = arith.addf %89, %91 : vector<8x256xf32>
    %93 = arith.addf %92, %66 : vector<8x256xf32>
    %94 = vector.extract_strided_slice %93 {offsets = [0, 0], sizes = [4, 256], strides = [1, 1]} : vector<8x256xf32> to vector<4x256xf32>
    %95 = math.tanh %94 : vector<4x256xf32>
    %96 = vector.extract_strided_slice %93 {offsets = [4, 0], sizes = [4, 256], strides = [1, 1]} : vector<8x256xf32> to vector<4x256xf32>
    %97 = arith.negf %96 : vector<4x256xf32>
    %98 = math.exp %97 : vector<4x256xf32>
    %cst_31 = arith.constant 1.000000e+00 : f32
    %99 = vector.broadcast %cst_31 : f32 to vector<4x256xf32>
    %100 = arith.addf %99, %98 : vector<4x256xf32>
    %101 = arith.divf %99, %100 : vector<4x256xf32>
    %102 = arith.mulf %95, %101 : vector<4x256xf32>
    %c0_32 = arith.constant 0 : index
    %c0_33 = arith.constant 0 : index
    %103 = vector.load %arg11[%c0_32, %c0_33] : memref<4x4xf32, #tpu.memory_space<vmem>>, vector<4x4xf32>
    %cst_34 = arith.constant dense<0.000000e+00> : vector<4x256xf32>
    %104 = tpu.matmul %103, %102, %cst_34 {dimension_numbers = #tpu.dot_dimension_numbers<[1], [0], [0], [1], [0, 0, 1, 1], [], []>} : vector<4x4xf32>, vector<4x256xf32>, vector<4x256xf32> -> vector<4x256xf32>
    %c0_35 = arith.constant 0 : index
    %c0_36 = arith.constant 0 : index
    %105 = vector.load %arg12[%c0_35, %c0_36] : memref<4x1xf32, #tpu.memory_space<vmem>>, vector<4x1xf32>
    %106 = vector.broadcast %105 : vector<4x1xf32> to vector<4x256xf32>
    %107 = arith.addf %104, %106 : vector<4x256xf32>
    %108 = arith.addf %107, %80 : vector<4x256xf32>
    %c0_37 = arith.constant 0 : index
    %c0_38 = arith.constant 0 : index
    %c0_39 = arith.constant 0 : index
    %109 = vector.load %arg14[%c0_37, %c0_38, %c0_39] : memref<1x4x256xf32, #tpu.memory_space<vmem>>, vector<1x4x256xf32>
    %110 = vector.shape_cast %109 : vector<1x4x256xf32> to vector<4x256xf32>
    %111 = vector.shape_cast %108 : vector<4x256xf32> to vector<1x4x256xf32>
    tpu.vector_store %arg14[%c0_37, %c0_38, %c0_39], %111 {strides = array<i32>} : memref<1x4x256xf32, #tpu.memory_space<vmem>>, vector<1x4x256xf32>,
    return
  }
  func.func @transform_0(%arg0: i32, %arg1: i32) -> (i32, i32) {
    %c0_i32 = arith.constant 0 : i32
    %c0_i32_0 = arith.constant 0 : i32
    %c0_i32_1 = arith.constant 0 : i32
    return %c0_i32, %c0_i32_0 : i32, i32
  }
  func.func @transform_1(%arg0: i32, %arg1: i32) -> (i32, i32, i32) {
    %c0_i32 = arith.constant 0 : i32
    %c0_i32_0 = arith.constant 0 : i32
    return %arg0, %c0_i32, %arg1 : i32, i32, i32
  }
  func.func @transform_2(%arg0: i32, %arg1: i32) -> (i32, i32, i32) {
    %c0_i32 = arith.constant 0 : i32
    %c0_i32_0 = arith.constant 0 : i32
    return %arg0, %c0_i32, %arg1 : i32, i32, i32
  }
  func.func @transform_3(%arg0: i32, %arg1: i32) -> (i32, i32) {
    %c0_i32 = arith.constant 0 : i32
    %c0_i32_0 = arith.constant 0 : i32
    %c0_i32_1 = arith.constant 0 : i32
    return %c0_i32, %c0_i32_0 : i32, i32
  }
  func.func @transform_4(%arg0: i32, %arg1: i32) -> (i32, i32) {
    %c0_i32 = arith.constant 0 : i32
    %c0_i32_0 = arith.constant 0 : i32
    %c0_i32_1 = arith.constant 0 : i32
    return %c0_i32, %c0_i32_0 : i32, i32
  }
  func.func @transform_5(%arg0: i32, %arg1: i32) -> (i32, i32) {
    %c0_i32 = arith.constant 0 : i32
    %c0_i32_0 = arith.constant 0 : i32
    %c0_i32_1 = arith.constant 0 : i32
    return %c0_i32, %c0_i32_0 : i32, i32
  }
  func.func @transform_6(%arg0: i32, %arg1: i32) -> (i32, i32) {
    %c0_i32 = arith.constant 0 : i32
    %c0_i32_0 = arith.constant 0 : i32
    %c0_i32_1 = arith.constant 0 : i32
    return %c0_i32, %c0_i32_0 : i32, i32
  }
  func.func @transform_7(%arg0: i32, %arg1: i32) -> (i32, i32) {
    %c0_i32 = arith.constant 0 : i32
    %c0_i32_0 = arith.constant 0 : i32
    %c0_i32_1 = arith.constant 0 : i32
    return %c0_i32, %c0_i32_0 : i32, i32
  }
  func.func @transform_8(%arg0: i32, %arg1: i32) -> (i32, i32) {
    %c0_i32 = arith.constant 0 : i32
    %c0_i32_0 = arith.constant 0 : i32
    %c0_i32_1 = arith.constant 0 : i32
    return %c0_i32, %c0_i32_0 : i32, i32
  }
  func.func @transform_9(%arg0: i32, %arg1: i32) -> (i32, i32) {
    %c0_i32 = arith.constant 0 : i32
    %c0_i32_0 = arith.constant 0 : i32
    %c0_i32_1 = arith.constant 0 : i32
    return %c0_i32, %c0_i32_0 : i32, i32
  }
  func.func @transform_10(%arg0: i32, %arg1: i32) -> (i32, i32) {
    %c0_i32 = arith.constant 0 : i32
    %c0_i32_0 = arith.constant 0 : i32
    %c0_i32_1 = arith.constant 0 : i32
    return %c0_i32, %c0_i32_0 : i32, i32
  }
  func.func @transform_11(%arg0: i32, %arg1: i32) -> (i32, i32, i32) {
    %c0_i32 = arith.constant 0 : i32
    %c0_i32_0 = arith.constant 0 : i32
    return %arg0, %c0_i32, %arg1 : i32, i32, i32
  }
  func.func @transform_12(%arg0: i32, %arg1: i32) -> (i32, i32, i32) {
    %c0_i32 = arith.constant 0 : i32
    %c0_i32_0 = arith.constant 0 : i32
    return %arg0, %c0_i32, %arg1 : i32, i32, i32
  }
}

</mosaic_0001>

<bundles_post_ra>
// kernel: tpu_custom_call.1
= control target key start
LH: loop header
LB: loop body
LE: loop exit
PB: predicated region body
PF: predicated region fallthrough
CT: control target
= control target key end

     0   :  { %s2015_s0 = inlined_call_operand.hbm [shape: s32[1,256], index: 0, kind: input, shape index: {}]   ;;  %s2016_s1 = inlined_call_operand.vmem [shape: f32[2,4,256], index: 1, kind: input, shape index: {}]   ;;  %s2017_s2 = inlined_call_operand.vmem [shape: f32[2,4,256], index: 2, kind: input, shape index: {}]   ;;  %s2018_s3 = inlined_call_operand.hbm [shape: f32[16,24], index: 3, kind: input, shape index: {}]   ;;  %s2019_s4 = inlined_call_operand.vmem [shape: f32[8,1], index: 4, kind: input, shape index: {}]   ;;  %s2020_s5 = inlined_call_operand.vmem [shape: f32[8,1], index: 5, kind: input, shape index: {}]   ;;  %s2021_s6 = inlined_call_operand.vmem [shape: f32[8,1], index: 6, kind: input, shape index: {}]   ;;  %s2022_s7 = inlined_call_operand.hbm [shape: f32[8,8], index: 7, kind: input, shape index: {}]   ;;  %s2023_s8 = inlined_call_operand.vmem [shape: f32[8,1], index: 8, kind: input, shape index: {}]   ;;  %s2024_s9 = inlined_call_operand.vmem [shape: f32[4,4], index: 9, kind: input, shape index: {}]   ;;  %s2025_s10 = inlined_call_operand.vmem [shape: f32[4,1], index: 10, kind: input, shape index: {}]   ;;  %s2026_s11 = inlined_call_operand.hbm [shape: f32[2,4,256], index: 11, kind: output, shape index: {0}]   ;;  %s2027_s12 = inlined_call_operand.hbm [shape: f32[2,4,256], index: 12, kind: output, shape index: {1}]  }
   0x1   :  { %2036 = sst [smem:[#allocation22_spill]] %s2018_s3 }
   0x2   :  { %2037 = sst [smem:[#allocation23_spill]] %s2027_s12 }
   0x3   :  { %18 = vsyncpa [#allocation3], 0 }
   0x4   :  { %19 = vsyncpa [#allocation6], 0 }
   0x5   :  { %20 = vsyncpa [#allocation4], 0 }
   0x6   :  { %22 = vsyncpa [#allocation4 + $0x1], 0 }
   0x7   :  { %23 = vsyncpa [#allocation10], 0 }
   0x8   :  { %25 = vsyncpa [#allocation10 + $0x1], 0  ;;  %s1769_s21 = smov 0   ;;  %s1771_s22 = smov 0  }
   0x9   :  { %s1773_s23 = smov 0   ;;  %s1775_s24 = smov 0  }
   0xa   :  { %s1777_s25 = smov 0   ;;  %s1779_s26 = smov 0  }
   0xb LB: > { %2038 = sst [smem:[#allocation15_spill]] %s1665_s21  ;;  %s1249_s27 = sadd.s32 4294967295, %s1685_s26   ;;  %s1685_s26 = sphi %s1779_s26, %s31_s26   ;;  %s1681_s25 = sphi %s1777_s25, %s2058_s25   ;;  %s1677_s24 = sphi %s1775_s24, %s2057_s24   ;;  %s1673_s23 = sphi %s1773_s23, %s2056_s23   ;;  %s1669_s22 = sphi %s1771_s22, %s2060_s22   ;;  %s1665_s21 = sphi %s1769_s21, %s2059_s21  }
   0xc   : > { %2039 = sst [smem:[#allocation16_spill]] %s1673_s23  ;;  %s1250_s28 = sadd.s32 4294967294, %s1685_s26  }
   0xd   : > { %2040 = sst [smem:[#allocation17_spill]] %s1681_s25  ;;  %s43_s29 = sadd.s32 1, %s1681_s25 }
   0xe   : > { %2041 = sst [smem:[#allocation18_spill]] %s1685_s26  ;;  %s297_s30 = sadd.s32 1, %s1673_s23 }
   0xf   : > { %p45_p0 = scmp.ge.s32.totalorder %s43_s29, 2  ;;  %p307_p1 = scmp.ne.s32.totalorder %s1673_s23, %s1669_s22 }
  0x10   : > { %p308_p2 = scmp.eq.s32.totalorder %s1249_s27, 1  ;;  %p313_p3 = scmp.ne.s32.totalorder %s1669_s22, %s1665_s21 }
  0x11   : > { %s2062_s29 = smov (%p45_p0, %s43_s29), 0  ;;  %p314_p5 = scmp.eq.s32.totalorder %s1250_s28, 1 }
  0x12   : > { %2042 = sst [smem:[#allocation19_spill]] %s2062_s29  ;;  %p1809_p4 = por %p308_p2, %p307_p1 }
  0x13   : > { %s292_s14 = ssub.s32 %s1681_s25, %s2062_s29  ;;  %p1251_p6 = scmp.ge.s32.totalorder %s1685_s26, 1 }
  0x14   : > { %p295_p7 = scmp.eq.s32.totalorder %s292_s14, 0  ;;  %p1816_p8 = por %p314_p5, %p313_p3 }
  0x15   : > { %p349_p9 = scmp.lt.s32.totalorder %s1685_s26, 3  ;;  %p1828_p11 = scmp.eq.s32.totalorder %s1249_s27, 0 }
  0x16   : > { %s2044_s15 = scalar_select %p1816_p8, 1, 0 }
  0x17   : > { %s1822_s16 = scalar_select %p295_p7, %s1673_s23, %s297_s30  }
  0x18   : > { %2045 = sst [smem:[#allocation20_spill]] %s2044_s15  ;;  %p1824_p10 = pnand %p1251_p6, %p349_p9 }
  0x19   : > { %2046 = sst [smem:[#allocation21_spill]] %s1822_s16  ;;  %s1687_s14 = smov [#allocation5]  }
  0x1a   : > { %s2049_s3 = sld [smem:[#allocation22_spill]]  ;;  %p1311_p12 = pneg %p1824_p10 }
  0x1b   : > { %s374_s30 = sshll.u32 %s1687_s14, 4  ;;  %s1688_s27 = smov 128   ;;  %s375_s30 = int_to_ptr.vmem [resolvable:$true] %s374_s30 }
  0x1c   : > { %p1839_p13 = pnand %p1828_p11, %p1311_p12  ;;  %s1689_s25 = smov 8  }
  0x1d   : > { %s1690_s16 = smov [#allocation2]   ;;  %s396_s21 = sshll.u32 %s2022_s7, 4  ;;  %s397_s21 = int_to_ptr.hbm [resolvable:$true] %s396_s21 }
  0x1e   : > { %s363_s14 = sshll.u32 %s1690_s16, 4  ;;  %s1691_s26 = smov [#allocation7]   ;;  %s364_s14 = int_to_ptr.vmem [resolvable:$true] %s363_s14 }
  0x1f   : > { %s398_s12 = sshll.u32 %s1691_s26, 4  ;;  %446 = sbr.rel (%p1824_p10) target bundleno = 639 (0x27f), region = 64  ;;  %s399_s12 = int_to_ptr.vmem [resolvable:$true] %s398_s12 }
  0x20   : > { %s372_s28 = sshll.u32 %s2049_s3, 4  ;;  %s361_s3 = sshll.u32 %s2015_s0, 4  ;;  %s373_s28 = int_to_ptr.hbm [resolvable:$true] %s372_s28  ;;  %s362_s3 = int_to_ptr.hbm [resolvable:$true] %s361_s3 }
  0x21   : > { %1317 = dma.hbm_to_vmem [thread:$0]  (!%p1839_p13), %s373_s28, 256, %s375_s30, [#allocation6], %s1688_s27, %s1688_s27, %s1689_s25  }
  0x22   : > { %1314 = dma.hbm_to_vmem [thread:$0]  (!%p1839_p13), %s362_s3, 32, %s364_s14, [#allocation3]  }
  0x23   : > { %1320 = dma.hbm_to_vmem [thread:$0]  (!%p1839_p13), %s397_s21, 128, %s399_s12, [#allocation6]  }
  0x24   : > { %1648 = dma.done.wait (%p1828_p11), [#allocation3], 32  }
  0x25   : > { %1650 = vsyncadd (%p1828_p11), [#allocation3], 4294967264 }
  0x26   : > { %1652 = dma.done.wait (%p1828_p11), [#allocation6], 384  }
  0x27   : > { %1654 = vsyncadd (%p1828_p11), [#allocation6], 4294966912  ;;  %p518_p0 = scmp.lt.s32.totalorder %s1677_s24, 1  ;;  %v539_v1 = vld [vmem:[#allocation2] sm:$0x3]  ;;  %v1692_v4 = vmov 0.0  }
  0x28   : > { %v549_v2 = vadd.s32 1, %v539_v1  ;;  %v543_v3 = vadd.s32 4294967295, %v539_v1  ;;  %s1693_s16 = smov 33   ;;  %s1694_s17 = smov 18   ;;  %vm594_vm6 = vcmask 15360   ;;  %vm618_vm7 = vcmask 146432  }
  0x29   : > { %s519_s3 = scalar_select %p518_p0, %s1677_s24, 1  ;;  %vm574_vm8 = vcmask 269312   ;;  %vm606_vm9 = vcmask 130048   ;;  %vm853_vm10 = vcmask 7168   ;;  %vm695_vm11 = vcmask 900096  }
  0x2a   : > { %vm550_vm0 = vcmp.ge.s32.totalorder %v549_v2, 0  ;;  %vm551_vm1 = vcmp.lt.s32.totalorder %v549_v2, 16  ;;  %vm544_vm2 = vcmp.ge.s32.totalorder %v543_v3, 0  ;;  %vm545_vm3 = vcmp.lt.s32.totalorder %v543_v3, 16  ;;  %s1695_s18 = smov 2   ;;  %s1696_s28 = smov 16  }
  0x2b   : > { %s1291_s12 = sshll.u32 %s519_s3, 3  ;;  %vm552_vm4 = vmand %vm550_vm0, %vm551_vm1  ;;  %s1697_s30 = smov 1   ;;  %v782_v2 = vld [vmem:[%s2021_s6] sm:$0xff]  ;;  %vm678_vm12 = vcmask 908288   ;;  %vm700_vm13 = vcmask 1043456   ;;  %vm650_vm14 = vcmask 1031168  }
  0x2c   : > { %s525_s25 = scalar_lea.vmem %s2016_s1, %s1291_s12  ;;  %s535_s15 = scalar_lea.vmem %s2017_s2, %s1291_s12  ;;  %v1267_v5 = vsel %vm552_vm4, 1.0, %v1692_v4  ;;  %vm546_vm5 = vmand %vm544_vm2, %vm545_vm3  ;;  %vm667_vm15 = vcmask 916480   ;;  %vm636_vm0 = vcmask 1039360   ;;  %vm709_vm1 = vcmask 195584  }
  0x2d   : > { %v565_v0 = vld [vmem:[%s525_s25] sm:$0xff]  ;;  %v588_v6 = vperm.slane %v1267_v5, 0  ;;  %v589_v7 = vperm.slane %v1267_v5, 1  ;;  %v1266_v9 = vsel %vm546_vm5, 1.0, %v1692_v4  ;;  %s1698_s27 = smov 111   ;;  %s1699_s19 = smov 126  }
  0x2e   : > { %567 = vst [vmem:[#allocation1] ss:$2 sm:$0xff] %v565_v0  ;;  %v844_v8 = vld [vmem:[%s535_s15] sm:$0xff]  ;;  %v1875_v13 = vperm.slane %v1266_v9, 0  ;;  %v1877_v14 = vperm.slane %v1266_v9, 1  ;;  %s1700_s20 = smov 110  }
  0x2f   : > { %v1400_v11 = vpack.i.bf16 %v589_v7, %v588_v6  ;;  %s1701_s14 = smov 112   ;;  %s1702_s3 = smov 127   ;;  %v1703_v5 = vmov 0   ;;  %vm883_vm2 = vcmask 64512  }
  0x30   : > { %v1405_v15 = vpack.i.bf16 %v1877_v14, %v1875_v13  ;;  %1451 = vset.pattern.permute.xlu1 %v1703_v5  ;;  %1450 = vset.pattern.permute.xlu0 %v1703_v5 }
  0x31   : > { %1401 = vrot.lane.b32.xlu1 %v1400_v11, %s1694_s17  ;;  %1411 = vrot.lane.b32.xlu2 %v1400_v11, %s1695_s18 }
  0x32   : > { %1452 = vset.pattern.permute.xlu2 %v1703_v5 }
  0x35   : > { %v568_v10 = vld.sshfl [vmem:[#allocation1] sm:$0xff pattern:$0x75316420]  ;;  %v569_v12 = vld.sshfl [vmem:[#allocation1 + $0x8] sm:$0xff pattern:$0x75316420] }
  0x36   : > { %570 = vrot.lane.b32.xlu0 %v568_v10, %s1693_s16  ;;  %846 = vst [vmem:[#allocation1] ss:$2 sm:$0xff] %v844_v8 }
  0x39   : > { %1406 = vrot.lane.b32.xlu1 %v1405_v15, %s1696_s28  ;;  %v877_v15 = vld [vmem:[%s2023_s8] sm:$0xff]  ;;  %s1948_s28 = sand.u32 1, %s1669_s22  }
  0x3a   : > { %s1048_s26 = scalar_lea.sflag [#allocation4], %s1948_s28 }
  0x3d   : > { %v848_v16 = vld.sshfl [vmem:[#allocation1 + $0x8] sm:$0xff pattern:$0x75316420]  ;;  %v847_v17 = vld.sshfl [vmem:[#allocation1] sm:$0xff pattern:$0x75316420] }
  0x3e   : > { %572 = vrot.lane.b32.xlu0 %v569_v12, %s1693_s16  ;;  %1034 = vst [vmem:[#allocation1] ss:$2 sm:$0xff] %v844_v8  ;;  %849 = vrot.lane.b32.xlu2 %v847_v17, %s1697_s30  ;;  %v762_v8 = vld [vmem:[%s2019_s4] sm:$0xff] }
  0x3f   : > { %v772_v12 = vld [vmem:[%s2020_s5] sm:$0xff] }
  0x46   : > { %851 = vrot.lane.b32.xlu0 %v848_v16, %s1697_s30  ;;  %s1260_s30 = sshll.u32 %s1948_s28, 3 }
  0x8b   : > { %v1412_v20 = vpop.permute.xlu2 %1411 }
  0x8c   : > { %v1414_v21 = vunpack.i.h.bf16 %v1412_v20  ;;  %v1413_v23 = vunpack.i.l.bf16 %v1412_v20 }
  0x8e   : > { %v595_v25 = vsel %vm594_vm6, %v1413_v23, %v1414_v21 }
  0x98   : > { %v850_v49 = vpop.permute.xlu2 %849 }
  0x99   : > { %v1894_v52 = vsel %vm853_vm10, 0.0, %v850_v49 }
  0x9a   : > { %v861_v58 = vrot.slane %v1894_v52, 4 }
  0xa3   : > { %v1402_v19 = vpop.permute.xlu1 %1401 }
  0xa4   : > { %v1404_v22 = vunpack.i.h.bf16 %v1402_v19  ;;  %v1403_v24 = vunpack.i.l.bf16 %v1402_v19 }
  0xa6   : > { %v619_v26 = vsel %vm618_vm7, %v1403_v24, %v1404_v22 }
  0xa8   : > { %v571_v18 = vpop.permute.xlu0 %570 }
  0xa9   : > { %v1881_v28 = vsel %vm574_vm8, 0.0, %v571_v18 }
  0xaa   : > { %v623_v32 = vmul.f32 %v1403_v24, %v1881_v28  ;;  %v599_v38 = vmul.f32 %v1413_v23, %v1881_v28  ;;  %v627_v55 = vrot.slane %v1881_v28, 4 }
  0xab   : > { %v1407_v30 = vpop.permute.xlu1 %1406 }
  0xac   : > { %v1409_v34 = vunpack.i.h.bf16 %v1407_v30  ;;  %v1408_v35 = vunpack.i.l.bf16 %v1407_v30  ;;  %v686_v41 = vrot.slane %v623_v32, 4 }
  0xae   : > { %v607_v42 = vsel %vm606_vm9, %v1408_v35, %v1409_v34  ;;  %v611_v45 = vmul.f32 %v1408_v35, %v1881_v28 }
  0xb0   : > { %v573_v27 = vpop.permute.xlu0 %572  ;;  %v658_v51 = vrot.slane %v611_v45, 4  ;;  %v585_v45 = vmul.f32 %v1875_v13, %v1881_v28 }
  0xb1   : > { %v1883_v29 = vsel %vm574_vm8, %v571_v18, %v573_v27  ;;  %676 = vrot.lane.b32.xlu2 %v573_v27, %s1698_s27  ;;  %v601_v31 = vmul.f32 %v1414_v21, %v573_v27  ;;  %v625_v40 = vmul.f32 %v1404_v22, %v573_v27  ;;  %v613_v48 = vmul.f32 %v1409_v34, %v573_v27 }
  0xb2   : > { %v1415_v33 = vpack.i.bf16 %v1883_v29, %v1881_v28  ;;  %v600_v36 = vmul.f32 %v595_v25, %v1883_v29  ;;  %v624_v37 = vmul.f32 %v619_v26, %v1883_v29  ;;  %v612_v47 = vmul.f32 %v607_v42, %v1883_v29  ;;  %v978_v26 = vld [vmem:[%s2025_s10] sm:$0xf] }
  0xb3   : > { %648 = vrot.lane.b32.xlu0 %v601_v31, %s1699_s19  ;;  %v688_v46 = vrot.slane %v625_v40, 4  ;;  %v628_v50 = vrot.slane %v1883_v29, 4  ;;  %v660_v54 = vrot.slane %v613_v48, 4  ;;  %v629_v0 = vrot.slane %v573_v27, 4 }
  0xb4   : > { %1416 = vrot.lane.b32.xlu1 %v1415_v33, %s1698_s27  ;;  %v687_v39 = vrot.slane %v624_v37, 4  ;;  %v1420_v43 = vpack.i.bf16 %v600_v36, %v599_v38  ;;  %v659_v53 = vrot.slane %v612_v47, 4  ;;  %s509_s27 = scalar_lea.vmem [#allocation8], %s1260_s30 }
  0xb5   : > { %v1430_v59 = vpack.i.bf16 %v628_v50, %v627_v55  ;;  %v858_v55 = vmul.f32 %v1894_v52, %v1875_v13  ;;  %v708_v13 = vld [vmem:[#allocation5 + $0x8] sm:$0xff]  ;;  %s1068_s23 = sshll.u32 %s509_s27, 4  ;;  %s1069_s23 = int_to_ptr.vmem [resolvable:$true] %s1068_s23 }
  0xb6   : > { %v1425_v44 = vpack.i.bf16 %v687_v39, %v686_v41  ;;  %v1435_v60 = vpack.i.bf16 %v659_v53, %v658_v51 }
  0xb8   : > { %v852_v56 = vpop.permute.xlu0 %851 }
  0xb9   : > { %1421 = vrot.lane.b32.xlu2 %v1420_v43, %s1699_s19  ;;  %v863_v57 = vrot.slane %v852_v56, 4  ;;  %v1898_v61 = vsel %vm853_vm10, %v850_v49, %v852_v56  ;;  %v586_v56 = vmul.f32 %v1877_v14, %v1883_v29  ;;  %v540_v29 = vlaneseq }
  0xba   : > { %v862_v63 = vrot.slane %v1898_v61, 4  ;;  %v859_v28 = vmul.f32 %v1898_v61, %v1877_v14 }
  0xbb   : > { %1426 = vrot.lane.b32.xlu0 %v1425_v44, %s1700_s20  ;;  %v1445_v62 = vpack.i.bf16 %v861_v58, %v863_v57  ;;  %v541_v52 = vand.u32 127, %v540_v29 }
  0xbc   : > { %693 = vrot.lane.b32.xlu1 %v688_v46, %s1700_s20  ;;  %v1440_v1 = vpack.i.bf16 %v862_v63, %v629_v0  ;;  %v707_v46 = vld [vmem:[#allocation5] sm:$0xff]  ;;  %v876_v0 = vld [vmem:[#allocation7] sm:$0xff] }
  0xbd   : > { %vm559_vm3 = vcmp.ge.s32.totalorder %v541_v52, 16 }
  0xc1   : > { %665 = vrot.lane.b32.xlu2 %v660_v54, %s1701_s14 }
  0xc3   : > { %1431 = vrot.lane.b32.xlu0 %v1430_v59, %s1702_s3 }
  0xc4   : > { %1436 = vrot.lane.b32.xlu1 %v1435_v60, %s1701_s14  ;;  %s1293_s14 = sshll.u32 %s1677_s24, 3  ;;  %s1587_s24 = scalar_lea.hbm %s2026_s11, 16 }
  0xc5   : > { %s1066_s21 = scalar_lea.hbm %s2026_s11, %s1293_s14 }
  0xc6   : > { %s1070_s25 = sshll.u32 %s1066_s21, 4  ;;  %s1071_s25 = int_to_ptr.hbm [resolvable:$true] %s1070_s25 }
  0xc7   : > { %s1581_s29 = sshra.s32 %s1071_s25, 4  ;;  %s1582_s29 = int_to_ptr.hbm [resolvable:$true] %s1581_s29 }
  0xc8   : > { %s1583_s15 = scalar_lea.hbm %s1582_s29, 8  ;;  %p1588_p5 = scmp.lt.s32.totalorder %s1582_s29, %s2026_s11 }
  0xc9   : > { %1446 = vrot.lane.b32.xlu2 %v1445_v62, %s1702_s3  ;;  %p1584_p1 = scmp.ne.s32.totalorder %s1582_s29, %s1583_s15  ;;  %p1589_p6 = scmp.lt.s32.totalorder %s1587_s24, %s1583_s15 }
  0xcb   : > { %775 = vperm.xlu0 %1450, %v772_v12   ;;  %p1585_p2 = pnand %p1584_p1, %p1809_p4  ;;  %p1590_p7 = por %p1589_p6, %p1588_p5 }
  0xcc   : > { %1441 = vrot.lane.b32.xlu1 %v1440_v1, %s1702_s3  ;;  %v1268_v1 = vsel %vm559_vm3, 1.0, %v1692_v4 }
  0xcd   : > { %p1586_p3 = pneg %p1585_p2 }
  0xcf   : > { %p1591_p9 = pnand %p1590_p7, %p1586_p3 }
  0xd1   : > { %880 = vperm.xlu2 %1452, %v877_v15  }
  0xd4   : > { %785 = vperm.xlu1 %1451, %v782_v2  }
  0xd9   : > { %981 = vperm.xlu2 %1452, %v978_v26  }
  0xdc   : > { %765 = vperm.xlu1 %1451, %v762_v8  }
 0x10b   : > { %v677_v3 = vpop.permute.xlu2 %676 }
 0x113   : > { %v1422_v9 = vpop.permute.xlu2 %1421 }
 0x114   : > { %v1424_v27 = vunpack.i.h.bf16 %v1422_v9  ;;  %v1423_v30 = vunpack.i.l.bf16 %v1422_v9 }
 0x116   : > { %v651_v38 = vsel %vm650_vm14, %v1423_v30, %v1424_v27 }
 0x11b   : > { %v666_v31 = vpop.permute.xlu2 %665 }
 0x123   : > { %v1447_v47 = vpop.permute.xlu2 %1446 }
 0x124   : > { %v1449_v50 = vunpack.i.h.bf16 %v1447_v47  ;;  %v1448_v51 = vunpack.i.l.bf16 %v1447_v47 }
 0x125   : > { %v649_v6 = vpop.permute.xlu0 %648 }
 0x126   : > { %v1417_v7 = vpop.permute.xlu1 %1416  ;;  %v652_v39 = vsel %vm650_vm14, %v1424_v27, %v649_v6 }
 0x127   : > { %v1419_v10 = vunpack.i.h.bf16 %v1417_v7  ;;  %v1418_v11 = vunpack.i.l.bf16 %v1417_v7 }
 0x129   : > { %v679_v21 = vsel %vm678_vm12, %v1418_v11, %v1419_v10  ;;  %v680_v23 = vsel %vm678_vm12, %v1419_v10, %v677_v3 }
 0x12d   : > { %v1427_v16 = vpop.permute.xlu0 %1426 }
 0x12e   : > { %v1429_v17 = vunpack.i.h.bf16 %v1427_v16  ;;  %v1428_v18 = vunpack.i.l.bf16 %v1427_v16  ;;  %v694_v19 = vpop.permute.xlu1 %693  ;;  %v881_v16 = vpop.permute.xlu2 %880 }
 0x130   : > { %v697_v20 = vsel %vm695_vm11, %v1429_v17, %v694_v19  ;;  %v696_v22 = vsel %vm695_vm11, %v1428_v18, %v1429_v17 }
 0x131   : > { %v705_v24 = vsel %vm700_vm13, %v679_v21, %v696_v22  ;;  %v706_v25 = vsel %vm700_vm13, %v680_v23, %v697_v20 }
 0x132   : > { %729 = vmatpush.msra.mxu0 %v705_v24  ;;  %752 = vmatpush.msra.mxu1 %v706_v25 }
 0x135   : > { %v1432_v32 = vpop.permute.xlu0 %1431 }
 0x136   : > { %v1434_v33 = vunpack.i.h.bf16 %v1432_v32  ;;  %v1433_v34 = vunpack.i.l.bf16 %v1432_v32  ;;  %v1437_v35 = vpop.permute.xlu1 %1436 }
 0x137   : > { %v1439_v36 = vunpack.i.h.bf16 %v1437_v35  ;;  %v1438_v37 = vunpack.i.l.bf16 %v1437_v35 }
 0x138   : > { %v637_v42 = vsel %vm636_vm0, %v1433_v34, %v1434_v33 }
 0x139   : > { %v668_v40 = vsel %vm667_vm15, %v1438_v37, %v1439_v36  ;;  %v669_v41 = vsel %vm667_vm15, %v1439_v36, %v666_v31  ;;  %v701_v48 = vsel %vm700_vm13, %v585_v45, %v637_v42 }
 0x13a   : > { %v703_v43 = vsel %vm700_vm13, %v651_v38, %v668_v40  ;;  %v704_v44 = vsel %vm700_vm13, %v652_v39, %v669_v41 }
 0x13b   : > { %730 = vmatpush.msra.mxu0 %v703_v43  ;;  %753 = vmatpush.msra.mxu1 %v704_v44 }
 0x13d   : > { %731 = vmatpush.msra.mxu0 %v701_v48  ;;  %v776_v8 = vpop.permute.xlu0 %775 }
 0x13e   : > { %v1442_v49 = vpop.permute.xlu1 %1441  ;;  %1269 = vmatmul.msk.f32.vlgmr.msra.gmra.mxu0 %vm709_vm1, %v707_v46 }
 0x13f   : > { %v1444_v53 = vunpack.i.h.bf16 %v1442_v49  ;;  %v1443_v54 = vunpack.i.l.bf16 %v1442_v49 }
 0x141   : > { %v638_v57 = vsel %vm636_vm0, %v1434_v33, %v1443_v54  ;;  %v870_v58 = vsel %vm636_vm0, %v1449_v50, %v1444_v53  ;;  %v871_v59 = vsel %vm636_vm0, %v1444_v53, %v1448_v51 }
 0x142   : > { %v702_v60 = vsel %vm700_vm13, %v586_v56, %v638_v57  ;;  %v874_v62 = vsel %vm700_vm13, %v858_v55, %v870_v58  ;;  %v875_v63 = vsel %vm700_vm13, %v859_v28, %v871_v59 }
 0x143   : > { %754 = vmatpush.msra.mxu1 %v702_v60  ;;  %902 = vmatpush.msra.mxu2 %v874_v62 }
 0x144   : > { %922 = vmatpush.msra.mxu3 %v875_v63  ;;  %1271 = vmatmul.msk.f32.vlgmr.msra.gmra.mxu1 %vm709_vm1, %v707_v46 }
 0x145   : > { %1275 = vmatmul.msk.f32.vlgmr.msra.gmra.mxu2 %vm883_vm2, %v876_v0  ;;  %1276 = vmatmul.msk.f32.vlgmr.msra.gmra.mxu3 %vm883_vm2, %v876_v0 }
 0x146   : > { %1270 = vmatmul.msk.f32.gmra.mxu0 %vm709_vm1, %v708_v13  ;;  %v786_v14 = vpop.permute.xlu1 %785 }
 0x14c   : > { %1272 = vmatmul.msk.f32.gmra.mxu1 %vm709_vm1, %v708_v13 }
 0x14e   : > { %v766_v61 = vpop.permute.xlu1 %765 }
 0x1bb   : > { %v733_v2 = vpop.f32.mrf.mxu0 }
 0x1bc   : > { %v768_v3 = vadd.f32 %v766_v61, %v733_v2 }
 0x1be   : > { %v770_v5 = vmul.f32 %v1268_v1, %v768_v3 }
 0x1c0   : > { %v1273_v6 = vmul.f32 -1.442695, %v770_v5 }
 0x1c1   : > { %v756_v7 = vpop.f32.mrf.mxu1 }
 0x1c2   : > { %1453 = vpow2.f32 %v1273_v6  ;;  %v769_v9 = vadd.f32 %v766_v61, %v756_v7 }
 0x1c3   : > { %v736_v10 = vpop.f32.mrf.mxu0 }
 0x1c4   : > { %v1274_v11 = vmul.f32 -1.442695, %v769_v9  ;;  %v778_v12 = vadd.f32 %v776_v8, %v736_v10 }
 0x1c6   : > { %1455 = vpow2.f32 %v1274_v11  ;;  %v780_v15 = vmul.f32 %v1268_v1, %v778_v12 }
 0x1c8   : > { %v1454_v17 = vpop.eup %1453  ;;  %v788_v18 = vadd.f32 %v786_v14, %v780_v15  ;;  %v904_v19 = vpop.f32.mrf.mxu2 }
 0x1c9   : > { %v924_v20 = vpop.f32.mrf.mxu3  ;;  %v798_v21 = vadd.f32 1.0, %v1454_v17  ;;  %v905_v4 = vadd.f32 %v904_v19, %v881_v16  ;;  %v759_v22 = vpop.f32.mrf.mxu1 }
 0x1ca   : > { %v779_v23 = vadd.f32 %v776_v8, %v759_v22  ;;  %v925_v24 = vadd.f32 %v924_v20, %v881_v16 }
 0x1cb   : > { %1457 = vrcp.f32 %v798_v21  ;;  %v1941_v26 = vadd.f32 %v905_v4, %v788_v18  ;;  %v811_v38 = vand.u32 2147483648, %v798_v21  ;;  %vm805_vm4 = vweird.f32 %v798_v21 }
 0x1cc   : > { %v1456_v25 = vpop.eup %1455  ;;  %v789_v27 = vadd.f32 %v786_v14, %v779_v23  ;;  %v809_v42 = vand.u32 2147483647, %v798_v21  ;;  %v977_v23 = vld [vmem:[%s2024_s9] sm:$0xf] }
 0x1cd   : > { %v799_v30 = vadd.f32 1.0, %v1456_v25  ;;  %v1277_v31 = vmul.f32 -1.442695, %v1941_v26  ;;  %v812_v47 = vor.u32 1.1754944e-38, %v811_v38 }
 0x1ce   : > { %v1944_v32 = vadd.f32 %v925_v24, %v789_v27  ;;  %vm810_vm8 = vcmp.eq.f32.partialorder %v809_v42, 8.507059e+37 }
 0x1cf   : > { %1459 = vrcp.f32 %v799_v30  ;;  %v826_v48 = vand.u32 2147483648, %v799_v30  ;;  %v824_v53 = vand.u32 2147483647, %v799_v30  ;;  %vm820_vm9 = vweird.f32 %v799_v30 }
 0x1d0   : > { %1461 = vpow2.f32 %v1277_v31  ;;  %v1278_v33 = vmul.f32 -1.442695, %v1944_v32 }
 0x1d1   : > { %v1458_v34 = vpop.eup %1457  ;;  %v827_v28 = vor.u32 1.1754944e-38, %v826_v48  ;;  %vm825_vm11 = vcmp.eq.f32.partialorder %v824_v53, 8.507059e+37 }
 0x1d2   : > { %v801_v35 = vmul.f32 %v1458_v34, %v798_v21  ;;  %1463 = vpow2.f32 %v1278_v33  ;;  %vm806_vm5 = vweird.f32 %v1458_v34 }
 0x1d3   : > { %1465 = vtanh.f32 %v769_v9  ;;  %vm807_vm6 = vmor %vm805_vm4, %vm806_vm5  ;;  %vm984_vm5 = vcmask 31744  }
 0x1d4   : > { %v802_v36 = vsub.f32 1.0, %v801_v35 }
 0x1d5   : > { %v1460_v37 = vpop.eup %1459 }
 0x1d6   : > { %v1462_v39 = vpop.eup %1461  ;;  %v803_v40 = vmul.f32 %v1458_v34, %v802_v36  ;;  %v816_v41 = vmul.f32 %v1460_v37, %v799_v30  ;;  %vm821_vm7 = vweird.f32 %v1460_v37 }
 0x1d7   : > { %v937_v43 = vadd.f32 1.0, %v1462_v39  ;;  %vm822_vm10 = vmor %vm820_vm9, %vm821_vm7 }
 0x1d8   : > { %v1464_v44 = vpop.eup %1463  ;;  %v804_v45 = vadd.f32 %v1458_v34, %v803_v40  ;;  %v817_v46 = vsub.f32 1.0, %v816_v41 }
 0x1d9   : > { %1467 = vrcp.f32 %v937_v43  ;;  %v938_v49 = vadd.f32 1.0, %v1464_v44  ;;  %v1466_v56 = vpop.eup %1465  ;;  %v948_v1 = vand.u32 2147483647, %v937_v43  ;;  %v950_v2 = vand.u32 2147483648, %v937_v43 }
 0x1da   : > { %v808_v50 = vsel %vm807_vm6, %v1458_v34, %v804_v45  ;;  %v818_v51 = vmul.f32 %v1460_v37, %v817_v46  ;;  %vm944_vm14 = vweird.f32 %v937_v43 }
 0x1db   : > { %1469 = vrcp.f32 %v938_v49  ;;  %v813_v54 = vsel %vm810_vm8, %v812_v47, %v808_v50  ;;  %v963_v7 = vand.u32 2147483647, %v938_v49  ;;  %v965_v8 = vand.u32 2147483648, %v938_v49 }
 0x1dc   : > { %1471 = vtanh.f32 %v770_v5  ;;  %v819_v55 = vadd.f32 %v1460_v37, %v818_v51  ;;  %v832_v59 = vrot.slane %v813_v54, 4  ;;  %v951_v12 = vor.u32 1.1754944e-38, %v950_v2 }
 0x1dd   : > { %1473 = vtanh.f32 %v1941_v26  ;;  %vm949_vm1 = vcmp.eq.f32.partialorder %v948_v1, 8.507059e+37  ;;  %vm959_vm2 = vweird.f32 %v938_v49  ;;  %v966_v18 = vor.u32 1.1754944e-38, %v965_v8 }
 0x1de   : > { %v823_v57 = vsel %vm822_vm10, %v1460_v37, %v819_v55  ;;  %1475 = vtanh.f32 %v1944_v32  ;;  %vm964_vm4 = vcmp.eq.f32.partialorder %v963_v7, 8.507059e+37 }
 0x1df   : > { %v1468_v58 = vpop.eup %1467  ;;  %v828_v60 = vsel %vm825_vm11, %v827_v28, %v823_v57 }
 0x1e0   : > { %v833_v62 = vrot.slane %v828_v60, 4  ;;  %v940_v63 = vmul.f32 %v1468_v58, %v937_v43  ;;  %vm945_vm12 = vweird.f32 %v1468_v58 }
 0x1e1   : > { %v1470_v0 = vpop.eup %1469  ;;  %vm946_vm0 = vmor %vm944_vm14, %vm945_vm12 }
 0x1e2   : > { %v1472_v13 = vpop.eup %1471  ;;  %v837_v14 = vmul.f32 %v1466_v56, %v833_v62  ;;  %v941_v29 = vsub.f32 1.0, %v940_v63  ;;  %v955_v52 = vmul.f32 %v1470_v0, %v938_v49  ;;  %vm960_vm15 = vweird.f32 %v1470_v0 }
 0x1e3   : > { %v836_v61 = vmul.f32 %v1472_v13, %v832_v59  ;;  %vm961_vm3 = vmor %vm959_vm2, %vm960_vm15  ;;  %v1474_v21 = vpop.eup %1473 }
 0x1e4   : > { %v840_v3 = vrot.slane %v837_v14, 4  ;;  %v942_v5 = vmul.f32 %v1468_v58, %v941_v29  ;;  %v956_v6 = vsub.f32 1.0, %v955_v52  ;;  %v1476_v25 = vpop.eup %1475 }
 0x1e6   : > { %v943_v9 = vadd.f32 %v1468_v58, %v942_v5  ;;  %v957_v10 = vmul.f32 %v1470_v0, %v956_v6  ;;  %v841_v11 = vsel %vm700_vm13, %v836_v61, %v840_v3 }
 0x1e7   : > { %843 = vst [vmem:[%s509_s27] sm:$0xff] %v841_v11 }
 0x1e8   : > { %v947_v15 = vsel %vm946_vm0, %v1468_v58, %v943_v9  ;;  %v958_v16 = vadd.f32 %v1470_v0, %v957_v10 }
 0x1e9   : > { %v952_v17 = vsel %vm949_vm1, %v951_v12, %v947_v15 }
 0x1ea   : > { %v971_v19 = vrot.slane %v952_v17, 4  ;;  %v962_v20 = vsel %vm961_vm3, %v1470_v0, %v958_v16 }
 0x1eb   : > { %v967_v4 = vsel %vm964_vm4, %v966_v18, %v962_v20 }
 0x1ec   : > { %v975_v22 = vmul.f32 %v1474_v21, %v971_v19  ;;  %v972_v24 = vrot.slane %v967_v4, 4 }
 0x1ee   : > { %1279 = vmatpush.msk.msrb.mxu2 %vm700_vm13, %v975_v22  ;;  %v976_v26 = vmul.f32 %v1476_v25, %v972_v24 }
 0x1ef   : > { %1280 = vmatmul.msk.f32.vlgmr.msrb.gmra.mxu2 %vm984_vm5, %v977_v23 }
 0x1f0   : > { %1281 = vmatpush.msk.msrb.mxu3 %vm700_vm13, %v976_v26 }
 0x1f1   : > { %1282 = vmatmul.msk.f32.vlgmr.msrb.gmra.mxu3 %vm984_vm5, %v977_v23 }
 0x1f2   : > { %1594 = shalt.err (!%p1591_p9)
}
 0x1f3   : > { %1307 = dma.vmem_to_hbm [thread:$0]  (%p1809_p4), %s1069_s23, 128, %s1071_s25, %s1048_s26   ;;  %v982_v30 = vpop.permute.xlu2 %981  ;;  %v1036_v32 = vld.sshfl [vmem:[#allocation1 + $0x8] sm:$0xff pattern:$0x75316420] }
 0x1f4   : > { %s2051_s3 = sld [smem:[#allocation23_spill]]  ;;  %v1035_v35 = vld.sshfl [vmem:[#allocation1] sm:$0xff pattern:$0x75316420]  ;;  %s516_s21 = scalar_lea.vmem [#allocation9], %s1260_s30 }
 0x1f5   : > { %s1085_s29 = sshll.u32 %s516_s21, 4  ;;  %s1053_s23 = scalar_lea.sflag [#allocation10], %s1948_s28  ;;  %s1086_s29 = int_to_ptr.vmem [resolvable:$true] %s1085_s29 }
 0x1fa   : > { %s1083_s12 = scalar_lea.hbm %s2051_s3, %s1293_s14  ;;  %s1615_s30 = scalar_lea.hbm %s2051_s3, 16 }
 0x1fb   : > { %s1087_s15 = sshll.u32 %s1083_s12, 4  ;;  %s1088_s15 = int_to_ptr.hbm [resolvable:$true] %s1087_s15 }
 0x1fc   : > { %s1609_s25 = sshra.s32 %s1088_s15, 4  ;;  %s1610_s25 = int_to_ptr.hbm [resolvable:$true] %s1609_s25 }
 0x1fd   : > { %s1611_s14 = scalar_lea.hbm %s1610_s25, 8  ;;  %p1616_p13 = scmp.lt.s32.totalorder %s1610_s25, %s2051_s3 }
 0x1fe   : > { %p1612_p10 = scmp.ne.s32.totalorder %s1610_s25, %s1611_s14  ;;  %p1617_p0 = scmp.lt.s32.totalorder %s1615_s30, %s1611_s14 }
 0x200   : > { %p1613_p11 = pnand %p1612_p10, %p1809_p4  ;;  %p1618_p1 = por %p1617_p0, %p1616_p13 }
 0x202   : > { %p1614_p12 = pneg %p1613_p11 }
 0x204   : > { %p1619_p2 = pnand %p1618_p1, %p1614_p12 }
 0x272   : > { %v1011_v27 = vpop.f32.mrf.mxu2 }
 0x273   : > { %v1012_v33 = vadd.f32 %v1011_v27, %v982_v30 }
 0x274   : > { %v1031_v31 = vpop.f32.mrf.mxu3 }
 0x275   : > { %v1032_v34 = vadd.f32 %v1031_v31, %v982_v30  ;;  %v1039_v37 = vadd.f32 %v1035_v35, %v1012_v33 }
 0x277   : > { %v1040_v36 = vadd.f32 %v1036_v32, %v1032_v34 }
 0x279   : > { %v1043_v38 = vrot.slane %v1040_v36, 4 }
 0x27b   : > { %v1044_v39 = vsel %vm700_vm13, %v1039_v37, %v1043_v38 }
 0x27c   : > { %1046 = vst [vmem:[%s516_s21] sm:$0xff] %v1044_v39 }
 0x27d   : > { %1622 = shalt.err (!%p1619_p2)
}
 0x27e   : > { %1308 = dma.vmem_to_hbm [thread:$0]  (%p1809_p4), %s1086_s29, 128, %s1088_s15, %s1053_s23  }
 0x27f PF: > { %s2052_s28 = sld [smem:[#allocation18_spill]] }
 0x280   : > { %s2053_s18 = sld [smem:[#allocation15_spill]] }
 0x285   : > { %p1334_p3 = scmp.ge.s32.totalorder %s2052_s28, 2 }
 0x286   : > { %s1099_s27 = sand.u32 1, %s2053_s18  }
 0x287   : > { %p1322_p5 = pnand %p1334_p3, %p1816_p8  ;;  %s1100_s20 = scalar_lea.sflag [#allocation4], %s1099_s27 }
 0x289   : > { %p1323_p6 = pneg %p1322_p5 }
 0x28b   : > { %1656 = dma.done.wait (%p1323_p6), %s1100_s20, 128  }
 0x28c   : > { %1658 = vsyncadd (%p1323_p6), %s1100_s20, 4294967168  ;;  %s1110_s12 = scalar_lea.sflag [#allocation10], %s1099_s27 }
 0x28d   : > { %1660 = dma.done.wait (%p1323_p6), %s1110_s12, 128  }
 0x28e   : > { %1662 = vsyncadd (%p1323_p6), %s1110_s12, 4294967168  ;;  %s31_s26 = sadd.s32 1, %s2052_s28   ;;  %s2055_s13 = sld [smem:[#allocation16_spill]] }
 0x28f   : > { %p28_p7 = scmp.ge.s32.totalorder %s31_s26, 4   ;;  %s2056_s23 = sld [smem:[#allocation21_spill]] }
 0x290   : > { %s2057_s24 = sld [smem:[#allocation17_spill]]  ;;  %s2059_s21 = smov %s1669_s22 }
 0x291   : > { %s2058_s25 = sld [smem:[#allocation19_spill]]  ;;  %30 = sbr.rel (!%p28_p7) target bundleno = 11 (0xb), region = 132 }
 0x294   : > { %s2060_s22 = smov %s2055_s13 }
 0x296   :  { %1116 = vsyncpa [#allocation3], 1 }
 0x297   :  { %1118 = vsyncpa [#allocation3 + $0x1], 1 }
 0x298   :  { %1119 = vsyncpa [#allocation6], 1 }
 0x299   :  { %1120 = vsyncpa [#allocation4], 1 }
 0x29a   :  { %1122 = vsyncpa [#allocation4 + $0x1], 1 }
 0x29b   :  { %1123 = vsyncpa [#allocation10], 1 }
 0x29c   :  { %1125 = vsyncpa [#allocation10 + $0x1], 1 }

</bundles_post_ra>
